<compile_context>
chip_gen: v7x
topology: tpu7x:2x2x1
jax: 0.10.0
libtpu: 0.0.40
codegen_flags: <defaults>
</compile_context>

<pallas_src>
import jax
import jax.numpy as jnp
from jax import lax
from jax.experimental import pallas as pl
from jax.experimental.pallas import tpu as pltpu


def lstm_tagger_kernel(embeds_ref, wih_ref, whh_ref, b_ref, wtag_ref, btag_ref,
                       out_ref, lstm_out_sc):
    """LSTM recurrence + hidden2tag linear + log_softmax, all in VMEM/vregs."""
    L = embeds_ref.shape[0]
    H = whh_ref.shape[0]

    # Hoisted input projection: (L, E) @ (E, 4H) + combined bias -> (L, 4H).
    # One big MXU call instead of L tiny M=1 calls inside the serial loop.
    xw = (jnp.dot(embeds_ref[...], wih_ref[...],
                  preferred_element_type=jnp.float32)
          + b_ref[...])                                           # (L, 4H)

    # h_0 = c_0 = 0 (PyTorch default when no initial hidden state is given).
    # Carried as plain values -> live in vregs, no VMEM round-trips.
    h = jnp.zeros((1, H), jnp.float32)
    c = jnp.zeros((1, H), jnp.float32)

    # Fully unrolled recurrence (L is static and small) — static store indices,
    # scheduler sees across iterations.
    for t in range(L):
        gates = xw[t:t + 1, :] + jnp.dot(h, whh_ref[...],
                                         preferred_element_type=jnp.float32)
        # PyTorch LSTM gate order: input, forget, cell(g), output.
        i_g = jax.nn.sigmoid(gates[:, 0 * H:1 * H])
        f_g = jax.nn.sigmoid(gates[:, 1 * H:2 * H])
        g_g = jnp.tanh(gates[:, 2 * H:3 * H])
        o_g = jax.nn.sigmoid(gates[:, 3 * H:4 * H])

        c = f_g * c + i_g * g_g
        h = o_g * jnp.tanh(c)
        lstm_out_sc[t:t + 1, :] = h                               # static sublane write

    # hidden2tag linear: (L, H) @ (H, T) + b.
    tag_space = (jnp.dot(lstm_out_sc[...], wtag_ref[...],
                         preferred_element_type=jnp.float32)
                 + btag_ref[...])                                 # (L, T)

    # log_softmax over dim=1 (tag axis), max-shifted for stability.
    m = jnp.max(tag_space, axis=1, keepdims=True)
    shifted = tag_space - m
    lse = jnp.log(jnp.sum(jnp.exp(shifted), axis=1, keepdims=True))
    out_ref[...] = shifted - lse


def lstm_tagger_forward(sentence, params):
    """sentence: (L,) int32 token ids. Returns (L, tagset_size) log-probs."""
    emb_table = params["embedding"]          # (V, E)
    w_ih = params["w_ih"]                    # (4H, E)   PyTorch layout
    w_hh = params["w_hh"]                    # (4H, H)
    b_ih = params["b_ih"]                    # (4H,)
    b_hh = params["b_hh"]                    # (4H,)
    w_tag = params["w_tag"]                  # (T, H)
    b_tag = params["b_tag"]                  # (T,)

    L = sentence.shape[0]
    H = w_hh.shape[1]
    T = w_tag.shape[0]

    # nn.Embedding lookup — glue (gather) in plain JAX.
    embeds = jnp.take(emb_table, sentence, axis=0)                # (L, E) f32

    # Pre-transpose weights so the kernel does row-major matmuls.
    wih_t = jnp.transpose(w_ih)              # (E, 4H)
    whh_t = jnp.transpose(w_hh)              # (H, 4H)
    b_comb = (b_ih + b_hh).reshape(1, 4 * H)  # (1, 4H)
    wtag_t = jnp.transpose(w_tag)            # (H, T)
    btag_2d = b_tag.reshape(1, T)            # (1, T)

    vmem_spec = pl.BlockSpec(memory_space=pltpu.MemorySpace.VMEM)

    out = pl.pallas_call(
        lstm_tagger_kernel,
        out_shape=jax.ShapeDtypeStruct((L, T), jnp.float32),
        in_specs=[vmem_spec] * 6,
        out_specs=vmem_spec,
        scratch_shapes=[
            pltpu.VMEM((L, H), jnp.float32),   # lstm_out (all hidden states)
        ],
    )(embeds, wih_t, whh_t, b_comb, wtag_t, btag_2d)
    return out


def reference_forward(sentence, params):
    """Pure-JAX reference matching PyTorch LSTMTagger.forward semantics."""
    emb = jnp.take(params["embedding"], sentence, axis=0)   # (L, E)
    H = params["w_hh"].shape[1]

    def step(carry, x_t):
        h, c = carry
        gates = (x_t @ params["w_ih"].T + params["b_ih"]
                 + h @ params["w_hh"].T + params["b_hh"])
        i = jax.nn.sigmoid(gates[0 * H:1 * H])
        f = jax.nn.sigmoid(gates[1 * H:2 * H])
        g = jnp.tanh(gates[2 * H:3 * H])
        o = jax.nn.sigmoid(gates[3 * H:4 * H])
        c_new = f * c + i * g
        h_new = o * jnp.tanh(c_new)
        return (h_new, c_new), h_new

    (_, _), hs = lax.scan(step, (jnp.zeros(H), jnp.zeros(H)), emb)
    tag_space = hs @ params["w_tag"].T + params["b_tag"]
    return jax.nn.log_softmax(tag_space, axis=1)


def init_params(key, embedding_dim, hidden_dim, vocab_size, tagset_size):
    ks = jax.random.split(key, 7)
    scale = 0.1
    return {
        "embedding": scale * jax.random.normal(ks[0], (vocab_size, embedding_dim), jnp.float32),
        "w_ih": scale * jax.random.normal(ks[1], (4 * hidden_dim, embedding_dim), jnp.float32),
        "w_hh": scale * jax.random.normal(ks[2], (4 * hidden_dim, hidden_dim), jnp.float32),
        "b_ih": scale * jax.random.normal(ks[3], (4 * hidden_dim,), jnp.float32),
        "b_hh": scale * jax.random.normal(ks[4], (4 * hidden_dim,), jnp.float32),
        "w_tag": scale * jax.random.normal(ks[5], (tagset_size, hidden_dim), jnp.float32),
        "b_tag": scale * jax.random.normal(ks[6], (tagset_size,), jnp.float32),
    }


if __name__ == "__main__":
    EMBEDDING_DIM = 32
    HIDDEN_DIM = 32   # 4H = 128 -> gate matmul N-width matches one vreg lane row
    VOCAB_SIZE = 16
    TAGSET_SIZE = 8
    SEQ_LEN = 8

    key = jax.random.PRNGKey(0)
    pkey, skey = jax.random.split(key)
    params = init_params(pkey, EMBEDDING_DIM, HIDDEN_DIM, VOCAB_SIZE, TAGSET_SIZE)
    sentence = jax.random.randint(skey, (SEQ_LEN,), 0, VOCAB_SIZE, dtype=jnp.int32)

    tag_scores = lstm_tagger_forward(sentence, params)
    tag_scores = jax.block_until_ready(tag_scores)

    ref = reference_forward(sentence, params)
    assert tag_scores.shape == (SEQ_LEN, TAGSET_SIZE)
    assert jnp.allclose(tag_scores, ref, atol=1e-4, rtol=1e-4), "mismatch vs reference"

    print("KERNEL_OK")
</pallas_src>

<mosaic_0001>
module attributes {stable_mosaic.version = 11 : i64} {
  func.func @lstm_tagger_kernel(%arg0: memref<8x32xf32, #tpu.memory_space<vmem>>, %arg1: memref<32x128xf32, #tpu.memory_space<vmem>>, %arg2: memref<32x128xf32, #tpu.memory_space<vmem>>, %arg3: memref<1x128xf32, #tpu.memory_space<vmem>>, %arg4: memref<32x8xf32, #tpu.memory_space<vmem>>, %arg5: memref<1x8xf32, #tpu.memory_space<vmem>>, %arg6: memref<8x8xf32, #tpu.memory_space<vmem>>, %arg7: memref<8x32xf32, #tpu.memory_space<vmem>>) attributes {dimension_semantics = [], scalar_prefetch = 0 : i64, scratch_operands = 1 : i64, tpu.core_type = #tpu.core_type<tc>} {
    %c0 = arith.constant 0 : index
    %c0_0 = arith.constant 0 : index
    %0 = vector.load %arg0[%c0, %c0_0] : memref<8x32xf32, #tpu.memory_space<vmem>>, vector<8x32xf32>
    %c0_1 = arith.constant 0 : index
    %c0_2 = arith.constant 0 : index
    %1 = vector.load %arg1[%c0_1, %c0_2] : memref<32x128xf32, #tpu.memory_space<vmem>>, vector<32x128xf32>
    %cst = arith.constant dense<0.000000e+00> : vector<8x128xf32>
    %2 = tpu.matmul %0, %1, %cst {dimension_numbers = #tpu.dot_dimension_numbers<[1], [0], [0], [1], [0, 0, 1, 1], [], []>} : vector<8x32xf32>, vector<32x128xf32>, vector<8x128xf32> -> vector<8x128xf32>
    %c0_3 = arith.constant 0 : index
    %c0_4 = arith.constant 0 : index
    %3 = vector.load %arg3[%c0_3, %c0_4] : memref<1x128xf32, #tpu.memory_space<vmem>>, vector<1x128xf32>
    %4 = vector.broadcast %3 : vector<1x128xf32> to vector<8x128xf32>
    %5 = arith.addf %2, %4 : vector<8x128xf32>
    %cst_5 = arith.constant 0.000000e+00 : f32
    %6 = vector.broadcast %cst_5 : f32 to vector<1x32xf32>
    %cst_6 = arith.constant 0.000000e+00 : f32
    %7 = vector.broadcast %cst_6 : f32 to vector<1x32xf32>
    %8 = vector.extract_strided_slice %5 {offsets = [0, 0], sizes = [1, 128], strides = [1, 1]} : vector<8x128xf32> to vector<1x128xf32>
    %c0_7 = arith.constant 0 : index
    %c0_8 = arith.constant 0 : index
    %9 = vector.load %arg2[%c0_7, %c0_8] : memref<32x128xf32, #tpu.memory_space<vmem>>, vector<32x128xf32>
    %cst_9 = arith.constant dense<0.000000e+00> : vector<1x128xf32>
    %10 = tpu.matmul %6, %9, %cst_9 {dimension_numbers = #tpu.dot_dimension_numbers<[1], [0], [0], [1], [0, 0, 1, 1], [], []>} : vector<1x32xf32>, vector<32x128xf32>, vector<1x128xf32> -> vector<1x128xf32>
    %11 = arith.addf %8, %10 : vector<1x128xf32>
    %12 = vector.extract_strided_slice %11 {offsets = [0, 0], sizes = [1, 32], strides = [1, 1]} : vector<1x128xf32> to vector<1x32xf32>
    %13 = arith.negf %12 : vector<1x32xf32>
    %14 = math.exp %13 : vector<1x32xf32>
    %cst_10 = arith.constant 1.000000e+00 : f32
    %15 = vector.broadcast %cst_10 : f32 to vector<1x32xf32>
    %16 = arith.addf %15, %14 : vector<1x32xf32>
    %17 = arith.divf %15, %16 : vector<1x32xf32>
    %18 = vector.extract_strided_slice %11 {offsets = [0, 32], sizes = [1, 32], strides = [1, 1]} : vector<1x128xf32> to vector<1x32xf32>
    %19 = arith.negf %18 : vector<1x32xf32>
    %20 = math.exp %19 : vector<1x32xf32>
    %cst_11 = arith.constant 1.000000e+00 : f32
    %21 = vector.broadcast %cst_11 : f32 to vector<1x32xf32>
    %22 = arith.addf %21, %20 : vector<1x32xf32>
    %23 = arith.divf %21, %22 : vector<1x32xf32>
    %24 = vector.extract_strided_slice %11 {offsets = [0, 64], sizes = [1, 32], strides = [1, 1]} : vector<1x128xf32> to vector<1x32xf32>
    %25 = math.tanh %24 : vector<1x32xf32>
    %26 = vector.extract_strided_slice %11 {offsets = [0, 96], sizes = [1, 32], strides = [1, 1]} : vector<1x128xf32> to vector<1x32xf32>
    %27 = arith.negf %26 : vector<1x32xf32>
    %28 = math.exp %27 : vector<1x32xf32>
    %cst_12 = arith.constant 1.000000e+00 : f32
    %29 = vector.broadcast %cst_12 : f32 to vector<1x32xf32>
    %30 = arith.addf %29, %28 : vector<1x32xf32>
    %31 = arith.divf %29, %30 : vector<1x32xf32>
    %32 = arith.mulf %23, %7 : vector<1x32xf32>
    %33 = arith.mulf %17, %25 : vector<1x32xf32>
    %34 = arith.addf %32, %33 : vector<1x32xf32>
    %35 = math.tanh %34 : vector<1x32xf32>
    %36 = arith.mulf %31, %35 : vector<1x32xf32>
    %c0_13 = arith.constant 0 : index
    %c0_14 = arith.constant 0 : index
    %37 = vector.load %arg7[%c0_13, %c0_14] : memref<8x32xf32, #tpu.memory_space<vmem>>, vector<1x32xf32>
    tpu.vector_store %arg7[%c0_13, %c0_14], %36 {strides = array<i32>} : memref<8x32xf32, #tpu.memory_space<vmem>>, vector<1x32xf32>,
    %38 = vector.extract_strided_slice %5 {offsets = [1, 0], sizes = [1, 128], strides = [1, 1]} : vector<8x128xf32> to vector<1x128xf32>
    %c0_15 = arith.constant 0 : index
    %c0_16 = arith.constant 0 : index
    %39 = vector.load %arg2[%c0_15, %c0_16] : memref<32x128xf32, #tpu.memory_space<vmem>>, vector<32x128xf32>
    %cst_17 = arith.constant dense<0.000000e+00> : vector<1x128xf32>
    %40 = tpu.matmul %36, %39, %cst_17 {dimension_numbers = #tpu.dot_dimension_numbers<[1], [0], [0], [1], [0, 0, 1, 1], [], []>} : vector<1x32xf32>, vector<32x128xf32>, vector<1x128xf32> -> vector<1x128xf32>
    %41 = arith.addf %38, %40 : vector<1x128xf32>
    %42 = vector.extract_strided_slice %41 {offsets = [0, 0], sizes = [1, 32], strides = [1, 1]} : vector<1x128xf32> to vector<1x32xf32>
    %43 = arith.negf %42 : vector<1x32xf32>
    %44 = math.exp %43 : vector<1x32xf32>
    %cst_18 = arith.constant 1.000000e+00 : f32
    %45 = vector.broadcast %cst_18 : f32 to vector<1x32xf32>
    %46 = arith.addf %45, %44 : vector<1x32xf32>
    %47 = arith.divf %45, %46 : vector<1x32xf32>
    %48 = vector.extract_strided_slice %41 {offsets = [0, 32], sizes = [1, 32], strides = [1, 1]} : vector<1x128xf32> to vector<1x32xf32>
    %49 = arith.negf %48 : vector<1x32xf32>
    %50 = math.exp %49 : vector<1x32xf32>
    %cst_19 = arith.constant 1.000000e+00 : f32
    %51 = vector.broadcast %cst_19 : f32 to vector<1x32xf32>
    %52 = arith.addf %51, %50 : vector<1x32xf32>
    %53 = arith.divf %51, %52 : vector<1x32xf32>
    %54 = vector.extract_strided_slice %41 {offsets = [0, 64], sizes = [1, 32], strides = [1, 1]} : vector<1x128xf32> to vector<1x32xf32>
    %55 = math.tanh %54 : vector<1x32xf32>
    %56 = vector.extract_strided_slice %41 {offsets = [0, 96], sizes = [1, 32], strides = [1, 1]} : vector<1x128xf32> to vector<1x32xf32>
    %57 = arith.negf %56 : vector<1x32xf32>
    %58 = math.exp %57 : vector<1x32xf32>
    %cst_20 = arith.constant 1.000000e+00 : f32
    %59 = vector.broadcast %cst_20 : f32 to vector<1x32xf32>
    %60 = arith.addf %59, %58 : vector<1x32xf32>
    %61 = arith.divf %59, %60 : vector<1x32xf32>
    %62 = arith.mulf %53, %34 : vector<1x32xf32>
    %63 = arith.mulf %47, %55 : vector<1x32xf32>
    %64 = arith.addf %62, %63 : vector<1x32xf32>
    %65 = math.tanh %64 : vector<1x32xf32>
    %66 = arith.mulf %61, %65 : vector<1x32xf32>
    %c1 = arith.constant 1 : index
    %c0_21 = arith.constant 0 : index
    %67 = vector.load %arg7[%c1, %c0_21] : memref<8x32xf32, #tpu.memory_space<vmem>>, vector<1x32xf32>
    tpu.vector_store %arg7[%c1, %c0_21], %66 {strides = array<i32>} : memref<8x32xf32, #tpu.memory_space<vmem>>, vector<1x32xf32>,
    %68 = vector.extract_strided_slice %5 {offsets = [2, 0], sizes = [1, 128], strides = [1, 1]} : vector<8x128xf32> to vector<1x128xf32>
    %c0_22 = arith.constant 0 : index
    %c0_23 = arith.constant 0 : index
    %69 = vector.load %arg2[%c0_22, %c0_23] : memref<32x128xf32, #tpu.memory_space<vmem>>, vector<32x128xf32>
    %cst_24 = arith.constant dense<0.000000e+00> : vector<1x128xf32>
    %70 = tpu.matmul %66, %69, %cst_24 {dimension_numbers = #tpu.dot_dimension_numbers<[1], [0], [0], [1], [0, 0, 1, 1], [], []>} : vector<1x32xf32>, vector<32x128xf32>, vector<1x128xf32> -> vector<1x128xf32>
    %71 = arith.addf %68, %70 : vector<1x128xf32>
    %72 = vector.extract_strided_slice %71 {offsets = [0, 0], sizes = [1, 32], strides = [1, 1]} : vector<1x128xf32> to vector<1x32xf32>
    %73 = arith.negf %72 : vector<1x32xf32>
    %74 = math.exp %73 : vector<1x32xf32>
    %cst_25 = arith.constant 1.000000e+00 : f32
    %75 = vector.broadcast %cst_25 : f32 to vector<1x32xf32>
    %76 = arith.addf %75, %74 : vector<1x32xf32>
    %77 = arith.divf %75, %76 : vector<1x32xf32>
    %78 = vector.extract_strided_slice %71 {offsets = [0, 32], sizes = [1, 32], strides = [1, 1]} : vector<1x128xf32> to vector<1x32xf32>
    %79 = arith.negf %78 : vector<1x32xf32>
    %80 = math.exp %79 : vector<1x32xf32>
    %cst_26 = arith.constant 1.000000e+00 : f32
    %81 = vector.broadcast %cst_26 : f32 to vector<1x32xf32>
    %82 = arith.addf %81, %80 : vector<1x32xf32>
    %83 = arith.divf %81, %82 : vector<1x32xf32>
    %84 = vector.extract_strided_slice %71 {offsets = [0, 64], sizes = [1, 32], strides = [1, 1]} : vector<1x128xf32> to vector<1x32xf32>
    %85 = math.tanh %84 : vector<1x32xf32>
    %86 = vector.extract_strided_slice %71 {offsets = [0, 96], sizes = [1, 32], strides = [1, 1]} : vector<1x128xf32> to vector<1x32xf32>
    %87 = arith.negf %86 : vector<1x32xf32>
    %88 = math.exp %87 : vector<1x32xf32>
    %cst_27 = arith.constant 1.000000e+00 : f32
    %89 = vector.broadcast %cst_27 : f32 to vector<1x32xf32>
    %90 = arith.addf %89, %88 : vector<1x32xf32>
    %91 = arith.divf %89, %90 : vector<1x32xf32>
    %92 = arith.mulf %83, %64 : vector<1x32xf32>
    %93 = arith.mulf %77, %85 : vector<1x32xf32>
    %94 = arith.addf %92, %93 : vector<1x32xf32>
    %95 = math.tanh %94 : vector<1x32xf32>
    %96 = arith.mulf %91, %95 : vector<1x32xf32>
    %c2 = arith.constant 2 : index
    %c0_28 = arith.constant 0 : index
    %97 = vector.load %arg7[%c2, %c0_28] : memref<8x32xf32, #tpu.memory_space<vmem>>, vector<1x32xf32>
    tpu.vector_store %arg7[%c2, %c0_28], %96 {strides = array<i32>} : memref<8x32xf32, #tpu.memory_space<vmem>>, vector<1x32xf32>,
    %98 = vector.extract_strided_slice %5 {offsets = [3, 0], sizes = [1, 128], strides = [1, 1]} : vector<8x128xf32> to vector<1x128xf32>
    %c0_29 = arith.constant 0 : index
    %c0_30 = arith.constant 0 : index
    %99 = vector.load %arg2[%c0_29, %c0_30] : memref<32x128xf32, #tpu.memory_space<vmem>>, vector<32x128xf32>
    %cst_31 = arith.constant dense<0.000000e+00> : vector<1x128xf32>
    %100 = tpu.matmul %96, %99, %cst_31 {dimension_numbers = #tpu.dot_dimension_numbers<[1], [0], [0], [1], [0, 0, 1, 1], [], []>} : vector<1x32xf32>, vector<32x128xf32>, vector<1x128xf32> -> vector<1x128xf32>
    %101 = arith.addf %98, %100 : vector<1x128xf32>
    %102 = vector.extract_strided_slice %101 {offsets = [0, 0], sizes = [1, 32], strides = [1, 1]} : vector<1x128xf32> to vector<1x32xf32>
    %103 = arith.negf %102 : vector<1x32xf32>
    %104 = math.exp %103 : vector<1x32xf32>
    %cst_32 = arith.constant 1.000000e+00 : f32
    %105 = vector.broadcast %cst_32 : f32 to vector<1x32xf32>
    %106 = arith.addf %105, %104 : vector<1x32xf32>
    %107 = arith.divf %105, %106 : vector<1x32xf32>
    %108 = vector.extract_strided_slice %101 {offsets = [0, 32], sizes = [1, 32], strides = [1, 1]} : vector<1x128xf32> to vector<1x32xf32>
    %109 = arith.negf %108 : vector<1x32xf32>
    %110 = math.exp %109 : vector<1x32xf32>
    %cst_33 = arith.constant 1.000000e+00 : f32
    %111 = vector.broadcast %cst_33 : f32 to vector<1x32xf32>
    %112 = arith.addf %111, %110 : vector<1x32xf32>
    %113 = arith.divf %111, %112 : vector<1x32xf32>
    %114 = vector.extract_strided_slice %101 {offsets = [0, 64], sizes = [1, 32], strides = [1, 1]} : vector<1x128xf32> to vector<1x32xf32>
    %115 = math.tanh %114 : vector<1x32xf32>
    %116 = vector.extract_strided_slice %101 {offsets = [0, 96], sizes = [1, 32], strides = [1, 1]} : vector<1x128xf32> to vector<1x32xf32>
    %117 = arith.negf %116 : vector<1x32xf32>
    %118 = math.exp %117 : vector<1x32xf32>
    %cst_34 = arith.constant 1.000000e+00 : f32
    %119 = vector.broadcast %cst_34 : f32 to vector<1x32xf32>
    %120 = arith.addf %119, %118 : vector<1x32xf32>
    %121 = arith.divf %119, %120 : vector<1x32xf32>
    %122 = arith.mulf %113, %94 : vector<1x32xf32>
    %123 = arith.mulf %107, %115 : vector<1x32xf32>
    %124 = arith.addf %122, %123 : vector<1x32xf32>
    %125 = math.tanh %124 : vector<1x32xf32>
    %126 = arith.mulf %121, %125 : vector<1x32xf32>
    %c3 = arith.constant 3 : index
    %c0_35 = arith.constant 0 : index
    %127 = vector.load %arg7[%c3, %c0_35] : memref<8x32xf32, #tpu.memory_space<vmem>>, vector<1x32xf32>
    tpu.vector_store %arg7[%c3, %c0_35], %126 {strides = array<i32>} : memref<8x32xf32, #tpu.memory_space<vmem>>, vector<1x32xf32>,
    %128 = vector.extract_strided_slice %5 {offsets = [4, 0], sizes = [1, 128], strides = [1, 1]} : vector<8x128xf32> to vector<1x128xf32>
    %c0_36 = arith.constant 0 : index
    %c0_37 = arith.constant 0 : index
    %129 = vector.load %arg2[%c0_36, %c0_37] : memref<32x128xf32, #tpu.memory_space<vmem>>, vector<32x128xf32>
    %cst_38 = arith.constant dense<0.000000e+00> : vector<1x128xf32>
    %130 = tpu.matmul %126, %129, %cst_38 {dimension_numbers = #tpu.dot_dimension_numbers<[1], [0], [0], [1], [0, 0, 1, 1], [], []>} : vector<1x32xf32>, vector<32x128xf32>, vector<1x128xf32> -> vector<1x128xf32>
    %131 = arith.addf %128, %130 : vector<1x128xf32>
    %132 = vector.extract_strided_slice %131 {offsets = [0, 0], sizes = [1, 32], strides = [1, 1]} : vector<1x128xf32> to vector<1x32xf32>
    %133 = arith.negf %132 : vector<1x32xf32>
    %134 = math.exp %133 : vector<1x32xf32>
    %cst_39 = arith.constant 1.000000e+00 : f32
    %135 = vector.broadcast %cst_39 : f32 to vector<1x32xf32>
    %136 = arith.addf %135, %134 : vector<1x32xf32>
    %137 = arith.divf %135, %136 : vector<1x32xf32>
    %138 = vector.extract_strided_slice %131 {offsets = [0, 32], sizes = [1, 32], strides = [1, 1]} : vector<1x128xf32> to vector<1x32xf32>
    %139 = arith.negf %138 : vector<1x32xf32>
    %140 = math.exp %139 : vector<1x32xf32>
    %cst_40 = arith.constant 1.000000e+00 : f32
    %141 = vector.broadcast %cst_40 : f32 to vector<1x32xf32>
    %142 = arith.addf %141, %140 : vector<1x32xf32>
    %143 = arith.divf %141, %142 : vector<1x32xf32>
    %144 = vector.extract_strided_slice %131 {offsets = [0, 64], sizes = [1, 32], strides = [1, 1]} : vector<1x128xf32> to vector<1x32xf32>
    %145 = math.tanh %144 : vector<1x32xf32>
    %146 = vector.extract_strided_slice %131 {offsets = [0, 96], sizes = [1, 32], strides = [1, 1]} : vector<1x128xf32> to vector<1x32xf32>
    %147 = arith.negf %146 : vector<1x32xf32>
    %148 = math.exp %147 : vector<1x32xf32>
    %cst_41 = arith.constant 1.000000e+00 : f32
    %149 = vector.broadcast %cst_41 : f32 to vector<1x32xf32>
    %150 = arith.addf %149, %148 : vector<1x32xf32>
    %151 = arith.divf %149, %150 : vector<1x32xf32>
    %152 = arith.mulf %143, %124 : vector<1x32xf32>
    %153 = arith.mulf %137, %145 : vector<1x32xf32>
    %154 = arith.addf %152, %153 : vector<1x32xf32>
    %155 = math.tanh %154 : vector<1x32xf32>
    %156 = arith.mulf %151, %155 : vector<1x32xf32>
    %c4 = arith.constant 4 : index
    %c0_42 = arith.constant 0 : index
    %157 = vector.load %arg7[%c4, %c0_42] : memref<8x32xf32, #tpu.memory_space<vmem>>, vector<1x32xf32>
    tpu.vector_store %arg7[%c4, %c0_42], %156 {strides = array<i32>} : memref<8x32xf32, #tpu.memory_space<vmem>>, vector<1x32xf32>,
    %158 = vector.extract_strided_slice %5 {offsets = [5, 0], sizes = [1, 128], strides = [1, 1]} : vector<8x128xf32> to vector<1x128xf32>
    %c0_43 = arith.constant 0 : index
    %c0_44 = arith.constant 0 : index
    %159 = vector.load %arg2[%c0_43, %c0_44] : memref<32x128xf32, #tpu.memory_space<vmem>>, vector<32x128xf32>
    %cst_45 = arith.constant dense<0.000000e+00> : vector<1x128xf32>
    %160 = tpu.matmul %156, %159, %cst_45 {dimension_numbers = #tpu.dot_dimension_numbers<[1], [0], [0], [1], [0, 0, 1, 1], [], []>} : vector<1x32xf32>, vector<32x128xf32>, vector<1x128xf32> -> vector<1x128xf32>
    %161 = arith.addf %158, %160 : vector<1x128xf32>
    %162 = vector.extract_strided_slice %161 {offsets = [0, 0], sizes = [1, 32], strides = [1, 1]} : vector<1x128xf32> to vector<1x32xf32>
    %163 = arith.negf %162 : vector<1x32xf32>
    %164 = math.exp %163 : vector<1x32xf32>
    %cst_46 = arith.constant 1.000000e+00 : f32
    %165 = vector.broadcast %cst_46 : f32 to vector<1x32xf32>
    %166 = arith.addf %165, %164 : vector<1x32xf32>
    %167 = arith.divf %165, %166 : vector<1x32xf32>
    %168 = vector.extract_strided_slice %161 {offsets = [0, 32], sizes = [1, 32], strides = [1, 1]} : vector<1x128xf32> to vector<1x32xf32>
    %169 = arith.negf %168 : vector<1x32xf32>
    %170 = math.exp %169 : vector<1x32xf32>
    %cst_47 = arith.constant 1.000000e+00 : f32
    %171 = vector.broadcast %cst_47 : f32 to vector<1x32xf32>
    %172 = arith.addf %171, %170 : vector<1x32xf32>
    %173 = arith.divf %171, %172 : vector<1x32xf32>
    %174 = vector.extract_strided_slice %161 {offsets = [0, 64], sizes = [1, 32], strides = [1, 1]} : vector<1x128xf32> to vector<1x32xf32>
    %175 = math.tanh %174 : vector<1x32xf32>
    %176 = vector.extract_strided_slice %161 {offsets = [0, 96], sizes = [1, 32], strides = [1, 1]} : vector<1x128xf32> to vector<1x32xf32>
    %177 = arith.negf %176 : vector<1x32xf32>
    %178 = math.exp %177 : vector<1x32xf32>
    %cst_48 = arith.constant 1.000000e+00 : f32
    %179 = vector.broadcast %cst_48 : f32 to vector<1x32xf32>
    %180 = arith.addf %179, %178 : vector<1x32xf32>
    %181 = arith.divf %179, %180 : vector<1x32xf32>
    %182 = arith.mulf %173, %154 : vector<1x32xf32>
    %183 = arith.mulf %167, %175 : vector<1x32xf32>
    %184 = arith.addf %182, %183 : vector<1x32xf32>
    %185 = math.tanh %184 : vector<1x32xf32>
    %186 = arith.mulf %181, %185 : vector<1x32xf32>
    %c5 = arith.constant 5 : index
    %c0_49 = arith.constant 0 : index
    %187 = vector.load %arg7[%c5, %c0_49] : memref<8x32xf32, #tpu.memory_space<vmem>>, vector<1x32xf32>
    tpu.vector_store %arg7[%c5, %c0_49], %186 {strides = array<i32>} : memref<8x32xf32, #tpu.memory_space<vmem>>, vector<1x32xf32>,
    %188 = vector.extract_strided_slice %5 {offsets = [6, 0], sizes = [1, 128], strides = [1, 1]} : vector<8x128xf32> to vector<1x128xf32>
    %c0_50 = arith.constant 0 : index
    %c0_51 = arith.constant 0 : index
    %189 = vector.load %arg2[%c0_50, %c0_51] : memref<32x128xf32, #tpu.memory_space<vmem>>, vector<32x128xf32>
    %cst_52 = arith.constant dense<0.000000e+00> : vector<1x128xf32>
    %190 = tpu.matmul %186, %189, %cst_52 {dimension_numbers = #tpu.dot_dimension_numbers<[1], [0], [0], [1], [0, 0, 1, 1], [], []>} : vector<1x32xf32>, vector<32x128xf32>, vector<1x128xf32> -> vector<1x128xf32>
    %191 = arith.addf %188, %190 : vector<1x128xf32>
    %192 = vector.extract_strided_slice %191 {offsets = [0, 0], sizes = [1, 32], strides = [1, 1]} : vector<1x128xf32> to vector<1x32xf32>
    %193 = arith.negf %192 : vector<1x32xf32>
    %194 = math.exp %193 : vector<1x32xf32>
    %cst_53 = arith.constant 1.000000e+00 : f32
    %195 = vector.broadcast %cst_53 : f32 to vector<1x32xf32>
    %196 = arith.addf %195, %194 : vector<1x32xf32>
    %197 = arith.divf %195, %196 : vector<1x32xf32>
    %198 = vector.extract_strided_slice %191 {offsets = [0, 32], sizes = [1, 32], strides = [1, 1]} : vector<1x128xf32> to vector<1x32xf32>
    %199 = arith.negf %198 : vector<1x32xf32>
    %200 = math.exp %199 : vector<1x32xf32>
    %cst_54 = arith.constant 1.000000e+00 : f32
    %201 = vector.broadcast %cst_54 : f32 to vector<1x32xf32>
    %202 = arith.addf %201, %200 : vector<1x32xf32>
    %203 = arith.divf %201, %202 : vector<1x32xf32>
    %204 = vector.extract_strided_slice %191 {offsets = [0, 64], sizes = [1, 32], strides = [1, 1]} : vector<1x128xf32> to vector<1x32xf32>
    %205 = math.tanh %204 : vector<1x32xf32>
    %206 = vector.extract_strided_slice %191 {offsets = [0, 96], sizes = [1, 32], strides = [1, 1]} : vector<1x128xf32> to vector<1x32xf32>
    %207 = arith.negf %206 : vector<1x32xf32>
    %208 = math.exp %207 : vector<1x32xf32>
    %cst_55 = arith.constant 1.000000e+00 : f32
    %209 = vector.broadcast %cst_55 : f32 to vector<1x32xf32>
    %210 = arith.addf %209, %208 : vector<1x32xf32>
    %211 = arith.divf %209, %210 : vector<1x32xf32>
    %212 = arith.mulf %203, %184 : vector<1x32xf32>
    %213 = arith.mulf %197, %205 : vector<1x32xf32>
    %214 = arith.addf %212, %213 : vector<1x32xf32>
    %215 = math.tanh %214 : vector<1x32xf32>
    %216 = arith.mulf %211, %215 : vector<1x32xf32>
    %c6 = arith.constant 6 : index
    %c0_56 = arith.constant 0 : index
    %217 = vector.load %arg7[%c6, %c0_56] : memref<8x32xf32, #tpu.memory_space<vmem>>, vector<1x32xf32>
    tpu.vector_store %arg7[%c6, %c0_56], %216 {strides = array<i32>} : memref<8x32xf32, #tpu.memory_space<vmem>>, vector<1x32xf32>,
    %218 = vector.extract_strided_slice %5 {offsets = [7, 0], sizes = [1, 128], strides = [1, 1]} : vector<8x128xf32> to vector<1x128xf32>
    %c0_57 = arith.constant 0 : index
    %c0_58 = arith.constant 0 : index
    %219 = vector.load %arg2[%c0_57, %c0_58] : memref<32x128xf32, #tpu.memory_space<vmem>>, vector<32x128xf32>
    %cst_59 = arith.constant dense<0.000000e+00> : vector<1x128xf32>
    %220 = tpu.matmul %216, %219, %cst_59 {dimension_numbers = #tpu.dot_dimension_numbers<[1], [0], [0], [1], [0, 0, 1, 1], [], []>} : vector<1x32xf32>, vector<32x128xf32>, vector<1x128xf32> -> vector<1x128xf32>
    %221 = arith.addf %218, %220 : vector<1x128xf32>
    %222 = vector.extract_strided_slice %221 {offsets = [0, 0], sizes = [1, 32], strides = [1, 1]} : vector<1x128xf32> to vector<1x32xf32>
    %223 = arith.negf %222 : vector<1x32xf32>
    %224 = math.exp %223 : vector<1x32xf32>
    %cst_60 = arith.constant 1.000000e+00 : f32
    %225 = vector.broadcast %cst_60 : f32 to vector<1x32xf32>
    %226 = arith.addf %225, %224 : vector<1x32xf32>
    %227 = arith.divf %225, %226 : vector<1x32xf32>
    %228 = vector.extract_strided_slice %221 {offsets = [0, 32], sizes = [1, 32], strides = [1, 1]} : vector<1x128xf32> to vector<1x32xf32>
    %229 = arith.negf %228 : vector<1x32xf32>
    %230 = math.exp %229 : vector<1x32xf32>
    %cst_61 = arith.constant 1.000000e+00 : f32
    %231 = vector.broadcast %cst_61 : f32 to vector<1x32xf32>
    %232 = arith.addf %231, %230 : vector<1x32xf32>
    %233 = arith.divf %231, %232 : vector<1x32xf32>
    %234 = vector.extract_strided_slice %221 {offsets = [0, 64], sizes = [1, 32], strides = [1, 1]} : vector<1x128xf32> to vector<1x32xf32>
    %235 = math.tanh %234 : vector<1x32xf32>
    %236 = vector.extract_strided_slice %221 {offsets = [0, 96], sizes = [1, 32], strides = [1, 1]} : vector<1x128xf32> to vector<1x32xf32>
    %237 = arith.negf %236 : vector<1x32xf32>
    %238 = math.exp %237 : vector<1x32xf32>
    %cst_62 = arith.constant 1.000000e+00 : f32
    %239 = vector.broadcast %cst_62 : f32 to vector<1x32xf32>
    %240 = arith.addf %239, %238 : vector<1x32xf32>
    %241 = arith.divf %239, %240 : vector<1x32xf32>
    %242 = arith.mulf %233, %214 : vector<1x32xf32>
    %243 = arith.mulf %227, %235 : vector<1x32xf32>
    %244 = arith.addf %242, %243 : vector<1x32xf32>
    %245 = math.tanh %244 : vector<1x32xf32>
    %246 = arith.mulf %241, %245 : vector<1x32xf32>
    %c7 = arith.constant 7 : index
    %c0_63 = arith.constant 0 : index
    %247 = vector.load %arg7[%c7, %c0_63] : memref<8x32xf32, #tpu.memory_space<vmem>>, vector<1x32xf32>
    tpu.vector_store %arg7[%c7, %c0_63], %246 {strides = array<i32>} : memref<8x32xf32, #tpu.memory_space<vmem>>, vector<1x32xf32>,
    %c0_64 = arith.constant 0 : index
    %c0_65 = arith.constant 0 : index
    %248 = vector.load %arg7[%c0_64, %c0_65] : memref<8x32xf32, #tpu.memory_space<vmem>>, vector<8x32xf32>
    %c0_66 = arith.constant 0 : index
    %c0_67 = arith.constant 0 : index
    %249 = vector.load %arg4[%c0_66, %c0_67] : memref<32x8xf32, #tpu.memory_space<vmem>>, vector<32x8xf32>
    %cst_68 = arith.constant dense<0.000000e+00> : vector<8x8xf32>
    %250 = tpu.matmul %248, %249, %cst_68 {dimension_numbers = #tpu.dot_dimension_numbers<[1], [0], [0], [1], [0, 0, 1, 1], [], []>} : vector<8x32xf32>, vector<32x8xf32>, vector<8x8xf32> -> vector<8x8xf32>
    %c0_69 = arith.constant 0 : index
    %c0_70 = arith.constant 0 : index
    %251 = vector.load %arg5[%c0_69, %c0_70] : memref<1x8xf32, #tpu.memory_space<vmem>>, vector<1x8xf32>
    %252 = vector.broadcast %251 : vector<1x8xf32> to vector<8x8xf32>
    %253 = arith.addf %250, %252 : vector<8x8xf32>
    %cst_71 = arith.constant dense<0xFF800000> : vector<8xf32>
    %254 = vector.multi_reduction <maximumf>, %253, %cst_71 [1] : vector<8x8xf32> to vector<8xf32>
    %255 = vector.shape_cast %254 : vector<8xf32> to vector<8x1xf32>
    %256 = vector.broadcast %255 : vector<8x1xf32> to vector<8x8xf32>
    %257 = arith.subf %253, %256 : vector<8x8xf32>
    %258 = math.exp %257 : vector<8x8xf32>
    %cst_72 = arith.constant dense<0.000000e+00> : vector<8xf32>
    %259 = vector.multi_reduction <add>, %258, %cst_72 [1] : vector<8x8xf32> to vector<8xf32>
    %260 = vector.shape_cast %259 : vector<8xf32> to vector<8x1xf32>
    %261 = math.log %260 : vector<8x1xf32>
    %262 = vector.broadcast %261 : vector<8x1xf32> to vector<8x8xf32>
    %263 = arith.subf %257, %262 : vector<8x8xf32>
    %c0_73 = arith.constant 0 : index
    %c0_74 = arith.constant 0 : index
    %264 = vector.load %arg6[%c0_73, %c0_74] : memref<8x8xf32, #tpu.memory_space<vmem>>, vector<8x8xf32>
    tpu.vector_store %arg6[%c0_73, %c0_74], %263 {strides = array<i32>} : memref<8x8xf32, #tpu.memory_space<vmem>>, vector<8x8xf32>,
    return
  }
}

</mosaic_0001>

<bundles_post_ra>
// kernel: tpu_custom_call.1
= control target key start
LH: loop header
LB: loop body
LE: loop exit
PB: predicated region body
PF: predicated region fallthrough
CT: control target
= control target key end

     0   :  { %11 = vsyncpa [#allocation4], 0  ;;  %s1757_s0 = inlined_call_operand.vmem [shape: f32[8,32], index: 0, kind: input, shape index: {}]   ;;  %s1758_s1 = inlined_call_operand.vmem [shape: f32[32,128], index: 1, kind: input, shape index: {}]   ;;  %s1759_s2 = inlined_call_operand.hbm [shape: f32[32,128], index: 2, kind: input, shape index: {}]   ;;  %s1760_s3 = inlined_call_operand.vmem [shape: f32[1,128], index: 3, kind: input, shape index: {}]   ;;  %s1761_s4 = inlined_call_operand.vmem [shape: f32[32,8], index: 4, kind: input, shape index: {}]   ;;  %s1762_s5 = inlined_call_operand.vmem [shape: f32[1,8], index: 5, kind: input, shape index: {}]   ;;  %s1763_s6 = inlined_call_operand.hbm [shape: f32[8,8], index: 6, kind: output, shape index: {}]  }
   0x1   :  { %12 = vsyncpa [#allocation5], 0  ;;  %s1519_s21 = smov [#allocation3]   ;;  %s1471_s25 = scalar_lea.hbm %s1759_s2, 512 }
   0x2   :  { %s22_s22 = sshll.u32 %s1519_s21, 4  ;;  %p1472_p0 = scmp.ne.s32.totalorder %s1759_s2, %s1471_s25  ;;  %s23_s22 = int_to_ptr.vmem [resolvable:$true] %s22_s22 }
   0x3   :  { %p1475_p1 = scmp.lt.u32.totalorder %s1471_s25, %s1759_s2 }
   0x5   :  { %p1477_p2 = pnand %p1475_p1, %p1472_p0 }
   0x7   :  { %1480 = shalt.err (!%p1477_p2)
}
   0x8   :  { %s1481_s30 = scalar_lea.vmem %s23_s22, 512  ;;  %p1486_p4 = scmp.lt.s32.totalorder %s23_s22, %s23_s22 }
   0x9   :  { %p1482_p3 = scmp.ne.s32.totalorder %s23_s22, %s1481_s30  ;;  %p1487_p5 = scmp.lt.s32.totalorder %s1481_s30, %s1481_s30 }
   0xb   :  { %p1488_p6 = por %p1487_p5, %p1486_p4 }
   0xd   :  { %p1489_p7 = pnand %p1488_p6, %p1482_p3 }
   0xf   :  { %1492 = shalt.err (!%p1489_p7)
}
  0x10   :  { %s1520_s7 = smov 128   ;;  %s1521_s8 = smov 8  }
  0x11   :  { %28 = dma.hbm_to_vmem [thread:$0]  %s1759_s2, 512, %s23_s22, [#allocation4], %s1520_s7, %s1520_s7, %s1521_s8  }
  0x12   :  { %1515 = dma.done.wait [#allocation4], 512  }
  0x13   :  { %1516 = vsyncadd [#allocation4], 4294966784  ;;  %v1522_v0 = vmov 0.0|0.0   ;;  %vm1523_vm0 = vmmov 0   ;;  %v1524_v1 = vmov 0.0   ;;  %v39_v2 = vld [vmem:[%s1758_s1] sm:$0xff] }
  0x14   :  { %1334 = vmatprep.subr.bf16.mxu0 %v1522_v0  ;;  %1340 = vmatprep.subr.bf16.mxu1 %v1522_v0  ;;  %v40_v3 = vld [vmem:[%s1758_s1 + $0x8] sm:$0xff]  ;;  %v125_v6 = vld [vmem:[#allocation3 + $0x8] sm:$0xff]  ;;  %v42_v8 = vld [vmem:[%s1758_s1 + $0x18] sm:$0xff]  ;;  %vm50_vm1 = vcmask 261120   ;;  %s1525_s20 = smov 64   ;;  %vm230_vm2 = vcmask 253952  }
  0x15   :  { %1232 = vmatprep.mubr.msk.f32.mxu0 %vm1523_vm0, %v1524_v1  ;;  %1243 = vmatprep.mubr.msk.f32.mxu1 %vm1523_vm0, %v1524_v1  ;;  %v124_v4 = vld [vmem:[#allocation3] sm:$0xff]  ;;  %v1335_v5 = vpack.c.bf16 %v40_v3, %v39_v2  ;;  %v41_v7 = vld [vmem:[%s1758_s1 + $0x10] sm:$0xff]  ;;  %v126_v10 = vld [vmem:[#allocation3 + $0x10] sm:$0xff]  ;;  %vm343_vm3 = vcmask 254977   ;;  %vm575_vm4 = vcmask 257027   ;;  %vm807_vm5 = vcmask 259077  }
  0x16   :  { %v1593_v9 = vpack.c.bf16 %v125_v6, %v124_v4  ;;  %v127_v11 = vld [vmem:[#allocation3 + $0x18] sm:$0xff]  ;;  %v1338_v12 = vpack.c.bf16 %v42_v8, %v41_v7  ;;  %vm459_vm6 = vcmask 256002   ;;  %vm691_vm7 = vcmask 258052   ;;  %s1527_s30 = smov [#allocation6]  }
  0x17   :  { %1336 = vmatpush3.bf16.msra.mxu0 %v1335_v5  ;;  %v1597_v13 = vpack.c.bf16 %v127_v11, %v126_v10  ;;  %v38_v14 = vld [vmem:[%s1757_s0] sm:$0xff]  ;;  %vm923_vm8 = vcmask 260102   ;;  %vm1039_vm9 = vcmask 261127   ;;  %vm1126_vm10 = vcmask 64512  }
  0x18   :  { %1342 = vmatpush3.bf16.msra.mxu1 %v1593_v9  ;;  %1337 = vmatprep.subr.bf16.mxu0 %v1522_v0  ;;  %v1155_v15 = vld [vmem:[%s1760_s3] ss:$0 sm:$0xff]  ;;  %s1526_s3 = smov 32  }
  0x19   :  { %1343 = vmatprep.subr.bf16.mxu1 %v1522_v0 }
  0x1b   :  { %1339 = vmatpush3.bf16.msra.mxu0 %v1338_v12 }
  0x1c   :  { %1345 = vmatpush3.bf16.msra.mxu1 %v1597_v13  ;;  %1346 = vmatprep.subr.bf16.mxu0 %v1522_v0 }
  0x1d   :  { %1352 = vmatprep.subr.bf16.mxu1 %v1522_v0 }
  0x1e   :  { %1233 = vmatmul.mubr.msk.f32.vlgmr.msra.gmra.mrb[0].mxu0 %vm50_vm1, %v38_v14 }
  0x1f   :  { %1244 = vmatmul.mubr.f32.vlgmr.msra.gmra.mrb[0].mxu1 %v1524_v1  ;;  %1348 = vmatpush3.bf16.msra.mxu0 %v1593_v9 }
  0x20   :  { %1349 = vmatprep.subr.bf16.mxu0 %v1522_v0  ;;  %1254 = vmatprep.mubr.msk.f32.mxu0 %vm1523_vm0, %v1524_v1 }
  0x21   :  { %1354 = vmatpush3.bf16.msra.mxu1 %v1593_v9  ;;  %1265 = vmatprep.mubr.msk.f32.mxu1 %vm1523_vm0, %v1524_v1 }
  0x22   :  { %1355 = vmatprep.subr.bf16.mxu1 %v1522_v0 }
  0x23   :  { %1351 = vmatpush3.bf16.msra.mxu0 %v1597_v13 }
  0x24   :  { %1358 = vmatprep.subr.bf16.mxu0 %v1522_v0 }
  0x25   :  { %1357 = vmatpush3.bf16.msra.mxu1 %v1597_v13 }
  0x26   :  { %1364 = vmatprep.subr.bf16.mxu1 %v1522_v0 }
  0xf1   :  { %v120_v16 = vpop.f32.mrb[0].mxu0 }
  0xf2   :  { %v1623_v17 = vadd.f32 %v1155_v15, %v120_v16  ;;  %v1234_v18 = vpop.f32.mrb[1].mxu0  ;;  %v197_v19 = vpop.f32.mrb[0].mxu1 }
  0xf3   :  { %v1245_v20 = vpop.f32.mrb[1].mxu1 }
  0xf4   :  { %v201_v21 = vadd.f32 %v197_v19, %v1623_v17 }
  0xf6   :  { %1403 = vtanh.f32 %v201_v21  ;;  %v1157_v23 = vmul.f32 -1.442695, %v201_v21 }
  0xf8   :  { %1405 = vpow2.f32 %v1157_v23 }
 0x100   :  { %v1404_v22 = vpop.eup %1403 }
 0x101   :  { %211 = vrot.lane.b32.xlu0 %v1404_v22, %s1525_s20 }
 0x102   :  { %v1406_v24 = vpop.eup %1405 }
 0x103   :  { %v205_v25 = vadd.f32 1.0, %v1406_v24 }
 0x105   :  { %1407 = vrcp.f32 %v205_v25 }
 0x10f   :  { %v1408_v26 = vpop.eup %1407 }
 0x110   :  { %v209_v29 = vmul.f32 0.0, %v1408_v26 }
 0x173   :  { %v212_v27 = vpop.permute.xlu0 %211 }
 0x174   :  { %v214_v28 = vmul.f32 %v1408_v26, %v212_v27 }
 0x176   :  { %216 = vrot.lane.b32.xlu0 %v214_v28, %s1526_s3 }
 0x1e8   :  { %v217_v30 = vpop.permute.xlu0 %216 }
 0x1e9   :  { %v219_v31 = vadd.f32 %v217_v30, %v209_v29 }
 0x1eb   :  { %1409 = vtanh.f32 %v219_v31  ;;  %v320_v47 = vrot.slane %v219_v31, 7 }
 0x1f5   :  { %v1410_v32 = vpop.eup %1409 }
 0x1f6   :  { %222 = vrot.lane.b32.xlu1 %v1410_v32, %s1525_s20 }
 0x268   :  { %v223_v33 = vpop.permute.xlu1 %222 }
 0x269   :  { %v225_v34 = vmul.f32 %v1408_v26, %v223_v33 }
 0x26b   :  { %227 = vrot.lane.b32.xlu1 %v225_v34, %s1526_s3 }
 0x2dd   :  { %v228_v35 = vpop.permute.xlu1 %227 }
 0x2de   :  { %231 = vst.msk [vmem:[#allocation2] sm:$0x1] %vm230_vm2, %v228_v35  ;;  %1255 = vmatmul.mubr.msk.f32.vlgmr.msra.gmra.mrb[2].mxu0 %vm50_vm1, %v228_v35 }
 0x2df   :  { %1360 = vmatpush3.bf16.msra.mxu0 %v1593_v9  ;;  %1276 = vmatprep.mubr.msk.f32.mxu0 %vm1523_vm0, %v1524_v1 }
 0x2e0   :  { %1361 = vmatprep.subr.bf16.mxu0 %v1522_v0 }
 0x2e3   :  { %1363 = vmatpush3.bf16.msra.mxu0 %v1597_v13 }
 0x2e4   :  { %1370 = vmatprep.subr.bf16.mxu0 %v1522_v0 }
 0x3b1   :  { %v304_v36 = vpop.f32.mrb[2].mxu0 }
 0x3b2   :  { %v309_v37 = vrot.slane %v304_v36, 7  ;;  %v1256_v38 = vpop.f32.mrb[3].mxu0 }
 0x3b4   :  { %v311_v39 = vadd.f32 %v309_v37, %v1623_v17 }
 0x3b6   :  { %1411 = vtanh.f32 %v311_v39  ;;  %v1159_v41 = vmul.f32 -1.442695, %v311_v39 }
 0x3b8   :  { %1413 = vpow2.f32 %v1159_v41 }
 0x3c0   :  { %v1412_v40 = vpop.eup %1411 }
 0x3c1   :  { %324 = vrot.lane.b32.xlu0 %v1412_v40, %s1525_s20 }
 0x3c2   :  { %v1414_v42 = vpop.eup %1413 }
 0x3c3   :  { %v315_v43 = vadd.f32 1.0, %v1414_v42 }
 0x3c5   :  { %1415 = vrcp.f32 %v315_v43 }
 0x3cf   :  { %v1416_v44 = vpop.eup %1415 }
 0x3d0   :  { %v322_v48 = vmul.f32 %v1416_v44, %v320_v47 }
 0x433   :  { %v325_v45 = vpop.permute.xlu0 %324 }
 0x434   :  { %v327_v46 = vmul.f32 %v1416_v44, %v325_v45 }
 0x436   :  { %329 = vrot.lane.b32.xlu1 %v327_v46, %s1526_s3 }
 0x4a8   :  { %v330_v49 = vpop.permute.xlu1 %329 }
 0x4a9   :  { %v332_v50 = vadd.f32 %v330_v49, %v322_v48 }
 0x4ab   :  { %1417 = vtanh.f32 %v332_v50  ;;  %v436_v5 = vrot.slane %v332_v50, 7 }
 0x4b5   :  { %v1418_v51 = vpop.eup %1417 }
 0x4b6   :  { %335 = vrot.lane.b32.xlu0 %v1418_v51, %s1525_s20 }
 0x528   :  { %v336_v52 = vpop.permute.xlu0 %335 }
 0x529   :  { %v1641_v53 = vmul.f32 %v1416_v44, %v336_v52 }
 0x52b   :  { %v349_v54 = vrot.slane %v1641_v53, 1 }
 0x52d   :  { %350 = vrot.lane.b32.xlu1 %v349_v54, %s1526_s3 }
 0x59f   :  { %v351_v55 = vpop.permute.xlu1 %350 }
 0x5a0   :  { %1266 = vmatmul.mubr.msk.f32.vlgmr.msra.gmra.mrb[2].mxu1 %vm50_vm1, %v351_v55 }
 0x5a1   :  { %1366 = vmatpush3.bf16.msra.mxu1 %v1593_v9  ;;  %1287 = vmatprep.mubr.msk.f32.mxu1 %vm1523_vm0, %v1524_v1 }
 0x5a2   :  { %1367 = vmatprep.subr.bf16.mxu1 %v1522_v0 }
 0x5a5   :  { %1369 = vmatpush3.bf16.msra.mxu1 %v1597_v13 }
 0x5a6   :  { %1376 = vmatprep.subr.bf16.mxu1 %v1522_v0 }
 0x673   :  { %v420_v56 = vpop.f32.mrb[2].mxu1 }
 0x674   :  { %v425_v57 = vrot.slane %v420_v56, 6  ;;  %v1267_v58 = vpop.f32.mrb[3].mxu1 }
 0x676   :  { %v427_v59 = vadd.f32 %v425_v57, %v1623_v17 }
 0x678   :  { %1419 = vtanh.f32 %v427_v59  ;;  %v1161_v61 = vmul.f32 -1.442695, %v427_v59 }
 0x67a   :  { %1421 = vpow2.f32 %v1161_v61 }
 0x682   :  { %v1420_v60 = vpop.eup %1419 }
 0x683   :  { %440 = vrot.lane.b32.xlu0 %v1420_v60, %s1525_s20 }
 0x684   :  { %v1422_v62 = vpop.eup %1421 }
 0x685   :  { %v431_v63 = vadd.f32 1.0, %v1422_v62 }
 0x687   :  { %1423 = vrcp.f32 %v431_v63 }
 0x691   :  { %v1424_v2 = vpop.eup %1423 }
 0x692   :  { %v438_v6 = vmul.f32 %v1424_v2, %v436_v5 }
 0x6f5   :  { %v441_v3 = vpop.permute.xlu0 %440 }
 0x6f6   :  { %v443_v4 = vmul.f32 %v1424_v2, %v441_v3 }
 0x6f8   :  { %445 = vrot.lane.b32.xlu1 %v443_v4, %s1526_s3 }
 0x76a   :  { %v446_v7 = vpop.permute.xlu1 %445 }
 0x76b   :  { %v448_v8 = vadd.f32 %v446_v7, %v438_v6 }
 0x76d   :  { %1425 = vtanh.f32 %v448_v8  ;;  %v552_v28 = vrot.slane %v448_v8, 7 }
 0x777   :  { %v1426_v10 = vpop.eup %1425 }
 0x778   :  { %451 = vrot.lane.b32.xlu0 %v1426_v10, %s1525_s20 }
 0x7ea   :  { %v452_v11 = vpop.permute.xlu0 %451 }
 0x7eb   :  { %v1656_v12 = vmul.f32 %v1424_v2, %v452_v11 }
 0x7ed   :  { %v465_v14 = vrot.slane %v1656_v12, 2 }
 0x7ef   :  { %466 = vrot.lane.b32.xlu1 %v465_v14, %s1526_s3 }
 0x861   :  { %v467_v15 = vpop.permute.xlu1 %466 }
 0x862   :  { %1277 = vmatmul.mubr.msk.f32.vlgmr.msra.gmra.mrb[4].mxu0 %vm50_vm1, %v467_v15 }
 0x863   :  { %1372 = vmatpush3.bf16.msra.mxu0 %v1593_v9  ;;  %1298 = vmatprep.mubr.msk.f32.mxu0 %vm1523_vm0, %v1524_v1 }
 0x864   :  { %1373 = vmatprep.subr.bf16.mxu0 %v1522_v0 }
 0x867   :  { %1375 = vmatpush3.bf16.msra.mxu0 %v1597_v13 }
 0x868   :  { %1382 = vmatprep.subr.bf16.mxu0 %v1522_v0 }
 0x935   :  { %v536_v16 = vpop.f32.mrb[4].mxu0 }
 0x936   :  { %v541_v18 = vrot.slane %v536_v16, 5  ;;  %v1278_v19 = vpop.f32.mrb[5].mxu0 }
 0x938   :  { %v543_v20 = vadd.f32 %v541_v18, %v1623_v17 }
 0x93a   :  { %1427 = vtanh.f32 %v543_v20  ;;  %v1163_v22 = vmul.f32 -1.442695, %v543_v20 }
 0x93c   :  { %1429 = vpow2.f32 %v1163_v22 }
 0x944   :  { %v1428_v21 = vpop.eup %1427 }
 0x945   :  { %556 = vrot.lane.b32.xlu0 %v1428_v21, %s1525_s20 }
 0x946   :  { %v1430_v23 = vpop.eup %1429 }
 0x947   :  { %v547_v24 = vadd.f32 1.0, %v1430_v23 }
 0x949   :  { %1431 = vrcp.f32 %v547_v24 }
 0x953   :  { %v1432_v25 = vpop.eup %1431 }
 0x954   :  { %v554_v29 = vmul.f32 %v1432_v25, %v552_v28 }
 0x9b7   :  { %v557_v26 = vpop.permute.xlu0 %556 }
 0x9b8   :  { %v559_v27 = vmul.f32 %v1432_v25, %v557_v26 }
 0x9ba   :  { %561 = vrot.lane.b32.xlu1 %v559_v27, %s1526_s3 }
 0xa2c   :  { %v562_v30 = vpop.permute.xlu1 %561 }
 0xa2d   :  { %v564_v31 = vadd.f32 %v562_v30, %v554_v29 }
 0xa2f   :  { %1433 = vtanh.f32 %v564_v31  ;;  %v668_v48 = vrot.slane %v564_v31, 7 }
 0xa39   :  { %v1434_v32 = vpop.eup %1433 }
 0xa3a   :  { %567 = vrot.lane.b32.xlu0 %v1434_v32, %s1525_s20 }
 0xaac   :  { %v568_v33 = vpop.permute.xlu0 %567 }
 0xaad   :  { %v1671_v34 = vmul.f32 %v1432_v25, %v568_v33 }
 0xaaf   :  { %v581_v35 = vrot.slane %v1671_v34, 3 }
 0xab1   :  { %582 = vrot.lane.b32.xlu1 %v581_v35, %s1526_s3 }
 0xb23   :  { %v583_v36 = vpop.permute.xlu1 %582 }
 0xb24   :  { %1288 = vmatmul.mubr.msk.f32.vlgmr.msra.gmra.mrb[4].mxu1 %vm50_vm1, %v583_v36 }
 0xb25   :  { %1378 = vmatpush3.bf16.msra.mxu1 %v1593_v9  ;;  %1309 = vmatprep.mubr.msk.f32.mxu1 %vm1523_vm0, %v1524_v1 }
 0xb26   :  { %1379 = vmatprep.subr.bf16.mxu1 %v1522_v0 }
 0xb29   :  { %1381 = vmatpush3.bf16.msra.mxu1 %v1597_v13 }
 0xb2a   :  { %1388 = vmatprep.subr.bf16.mxu1 %v1522_v0 }
 0xbf7   :  { %v652_v37 = vpop.f32.mrb[4].mxu1 }
 0xbf8   :  { %v657_v38 = vrot.slane %v652_v37, 4  ;;  %v1289_v39 = vpop.f32.mrb[5].mxu1 }
 0xbfa   :  { %v659_v40 = vadd.f32 %v657_v38, %v1623_v17 }
 0xbfc   :  { %1435 = vtanh.f32 %v659_v40  ;;  %v1165_v42 = vmul.f32 -1.442695, %v659_v40 }
 0xbfe   :  { %1437 = vpow2.f32 %v1165_v42 }
 0xc06   :  { %v1436_v41 = vpop.eup %1435 }
 0xc07   :  { %672 = vrot.lane.b32.xlu0 %v1436_v41, %s1525_s20 }
 0xc08   :  { %v1438_v43 = vpop.eup %1437 }
 0xc09   :  { %v663_v44 = vadd.f32 1.0, %v1438_v43 }
 0xc0b   :  { %1439 = vrcp.f32 %v663_v44 }
 0xc15   :  { %v1440_v45 = vpop.eup %1439 }
 0xc16   :  { %v670_v49 = vmul.f32 %v1440_v45, %v668_v48 }
 0xc79   :  { %v673_v46 = vpop.permute.xlu0 %672 }
 0xc7a   :  { %v675_v47 = vmul.f32 %v1440_v45, %v673_v46 }
 0xc7c   :  { %677 = vrot.lane.b32.xlu1 %v675_v47, %s1526_s3 }
 0xcee   :  { %v678_v50 = vpop.permute.xlu1 %677 }
 0xcef   :  { %v680_v51 = vadd.f32 %v678_v50, %v670_v49 }
 0xcf1   :  { %1441 = vtanh.f32 %v680_v51 }
 0xcfb   :  { %v1442_v52 = vpop.eup %1441 }
 0xcfc   :  { %683 = vrot.lane.b32.xlu0 %v1442_v52, %s1525_s20 }
 0xd6e   :  { %v684_v54 = vpop.permute.xlu0 %683 }
 0xd6f   :  { %v1686_v55 = vmul.f32 %v1440_v45, %v684_v54 }
 0xd71   :  { %v697_v56 = vrot.slane %v1686_v55, 4 }
 0xd73   :  { %698 = vrot.lane.b32.xlu1 %v697_v56, %s1526_s3 }
 0xde5   :  { %v699_v57 = vpop.permute.xlu1 %698 }
 0xde6   :  { %1299 = vmatmul.mubr.msk.f32.vlgmr.msra.gmra.mrb[6].mxu0 %vm50_vm1, %v699_v57 }
 0xde7   :  { %1384 = vmatpush3.bf16.msra.mxu0 %v1593_v9  ;;  %1320 = vmatprep.mubr.msk.f32.mxu0 %vm1523_vm0, %v1524_v1 }
 0xde8   :  { %1385 = vmatprep.subr.bf16.mxu0 %v1522_v0 }
 0xdeb   :  { %1387 = vmatpush3.bf16.msra.mxu0 %v1597_v13  ;;  %v784_v13 = vrot.slane %v680_v51, 7 }
 0xeb9   :  { %v768_v58 = vpop.f32.mrb[6].mxu0 }
 0xeba   :  { %v773_v59 = vrot.slane %v768_v58, 3  ;;  %v1300_v60 = vpop.f32.mrb[7].mxu0 }
 0xebc   :  { %v775_v61 = vadd.f32 %v773_v59, %v1623_v17  ;;  %v1044_v59 = vld [vmem:[%s1761_s4 + $0x10] sm:$0xff] }
 0xebe   :  { %1443 = vtanh.f32 %v775_v61  ;;  %v1167_v63 = vmul.f32 -1.442695, %v775_v61 }
 0xec0   :  { %1445 = vpow2.f32 %v1167_v63 }
 0xec8   :  { %v1444_v62 = vpop.eup %1443 }
 0xec9   :  { %788 = vrot.lane.b32.xlu0 %v1444_v62, %s1525_s20 }
 0xeca   :  { %v1446_v2 = vpop.eup %1445 }
 0xecb   :  { %v779_v9 = vadd.f32 1.0, %v1446_v2 }
 0xecd   :  { %1447 = vrcp.f32 %v779_v9 }
 0xed7   :  { %v1448_v3 = vpop.eup %1447 }
 0xed8   :  { %v786_v6 = vmul.f32 %v1448_v3, %v784_v13 }
 0xf3b   :  { %v789_v4 = vpop.permute.xlu0 %788 }
 0xf3c   :  { %v791_v5 = vmul.f32 %v1448_v3, %v789_v4 }
 0xf3e   :  { %793 = vrot.lane.b32.xlu1 %v791_v5, %s1526_s3 }
 0xfb0   :  { %v794_v7 = vpop.permute.xlu1 %793 }
 0xfb1   :  { %v796_v8 = vadd.f32 %v794_v7, %v786_v6 }
 0xfb3   :  { %1449 = vtanh.f32 %v796_v8 }
 0xfbd   :  { %v1450_v10 = vpop.eup %1449 }
 0xfbe   :  { %799 = vrot.lane.b32.xlu0 %v1450_v10, %s1525_s20 }
0x1030   :  { %v800_v11 = vpop.permute.xlu0 %799 }
0x1031   :  { %v802_v14 = vmul.f32 %v1448_v3, %v800_v11 }
0x1033   :  { %v813_v15 = vrot.slane %v802_v14, 5 }
0x1035   :  { %814 = vrot.lane.b32.xlu1 %v813_v15, %s1526_s3 }
0x10a7   :  { %v815_v16 = vpop.permute.xlu1 %814 }
0x10a8   :  { %1310 = vmatmul.mubr.msk.f32.vlgmr.msra.gmra.mrb[6].mxu1 %vm50_vm1, %v815_v16 }
0x10a9   :  { %1331 = vmatprep.mubr.msk.f32.mxu1 %vm1523_vm0, %v1524_v1  ;;  %v900_v1 = vrot.slane %v796_v8, 7 }
0x117b   :  { %v884_v18 = vpop.f32.mrb[6].mxu1 }
0x117c   :  { %v889_v19 = vrot.slane %v884_v18, 2  ;;  %v1311_v20 = vpop.f32.mrb[7].mxu1 }
0x117e   :  { %v891_v21 = vadd.f32 %v889_v19, %v1623_v17 }
0x1180   :  { %1451 = vtanh.f32 %v891_v21  ;;  %v1169_v23 = vmul.f32 -1.442695, %v891_v21 }
0x1182   :  { %1453 = vpow2.f32 %v1169_v23 }
0x118a   :  { %v1452_v22 = vpop.eup %1451 }
0x118b   :  { %904 = vrot.lane.b32.xlu0 %v1452_v22, %s1525_s20 }
0x118c   :  { %v1454_v24 = vpop.eup %1453 }
0x118d   :  { %v895_v25 = vadd.f32 1.0, %v1454_v24 }
0x118f   :  { %1455 = vrcp.f32 %v895_v25 }
0x1199   :  { %v1456_v26 = vpop.eup %1455 }
0x119a   :  { %v902_v29 = vmul.f32 %v1456_v26, %v900_v1 }
0x11fd   :  { %v905_v27 = vpop.permute.xlu0 %904 }
0x11fe   :  { %v907_v28 = vmul.f32 %v1456_v26, %v905_v27 }
0x1200   :  { %909 = vrot.lane.b32.xlu1 %v907_v28, %s1526_s3 }
0x1272   :  { %v910_v30 = vpop.permute.xlu1 %909 }
0x1273   :  { %v912_v31 = vadd.f32 %v910_v30, %v902_v29 }
0x1275   :  { %1457 = vtanh.f32 %v912_v31 }
0x127f   :  { %v1458_v32 = vpop.eup %1457 }
0x1280   :  { %915 = vrot.lane.b32.xlu0 %v1458_v32, %s1525_s20 }
0x12f2   :  { %v916_v33 = vpop.permute.xlu0 %915 }
0x12f3   :  { %v918_v35 = vmul.f32 %v1456_v26, %v916_v33 }
0x12f5   :  { %v929_v36 = vrot.slane %v918_v35, 6 }
0x12f7   :  { %930 = vrot.lane.b32.xlu1 %v929_v36, %s1526_s3 }
0x1369   :  { %v931_v37 = vpop.permute.xlu1 %930 }
0x136a   :  { %1321 = vmatmul.mubr.msk.f32.vlgmr.msra.gmra.mrb[8].mxu0 %vm50_vm1, %v931_v37 }
0x143d   :  { %v1000_v38 = vpop.f32.mrb[8].mxu0 }
0x143e   :  { %v1005_v39 = vrot.slane %v1000_v38, 1  ;;  %v1322_v40 = vpop.f32.mrb[9].mxu0 }
0x1440   :  { %v1007_v41 = vadd.f32 %v1005_v39, %v1623_v17  ;;  %v1016_v17 = vrot.slane %v912_v31, 7 }
0x1442   :  { %1459 = vtanh.f32 %v1007_v41  ;;  %v1171_v43 = vmul.f32 -1.442695, %v1007_v41 }
0x1444   :  { %1461 = vpow2.f32 %v1171_v43 }
0x144c   :  { %v1460_v42 = vpop.eup %1459 }
0x144d   :  { %1020 = vrot.lane.b32.xlu0 %v1460_v42, %s1525_s20 }
0x144e   :  { %v1462_v44 = vpop.eup %1461 }
0x144f   :  { %v1011_v45 = vadd.f32 1.0, %v1462_v44 }
0x1451   :  { %1463 = vrcp.f32 %v1011_v45 }
0x145b   :  { %v1464_v46 = vpop.eup %1463 }
0x145c   :  { %v1018_v49 = vmul.f32 %v1464_v46, %v1016_v17 }
0x14bf   :  { %v1021_v47 = vpop.permute.xlu0 %1020 }
0x14c0   :  { %v1023_v48 = vmul.f32 %v1464_v46, %v1021_v47 }
0x14c2   :  { %1025 = vrot.lane.b32.xlu1 %v1023_v48, %s1526_s3 }
0x14c6   :  { %340 = vrot.lane.b32.xlu1 %v1641_v53, %s1526_s3  ;;  %v1042_v53 = vld [vmem:[%s1761_s4] sm:$0xff] }
0x14ca   :  { %572 = vrot.lane.b32.xlu1 %v1671_v34, %s1526_s3  ;;  %v1043_v34 = vld [vmem:[%s1761_s4 + $0x8] sm:$0xff] }
0x14cb   :  { %v1389_v58 = vpack.c.bf16 %v1043_v34, %v1042_v53 }
0x14cd   :  { %1390 = vmatpush3.bf16.msra.mxu1 %v1389_v58 }
0x14ce   :  { %804 = vrot.lane.b32.xlu1 %v802_v14, %s1526_s3  ;;  %1391 = vmatprep.subr.bf16.mxu1 %v1522_v0  ;;  %v1172_v0 = vld [vmem:[%s1762_s5] ss:$0 sm:$0xff]  ;;  %s1146_s5 = sshll.u32 %s1527_s30, 4  ;;  %s1147_s5 = int_to_ptr.vmem [resolvable:$true] %s1146_s5 }
0x14cf   :  { %s1493_s7 = scalar_lea.vmem %s1147_s5, 128  ;;  %p1498_p9 = scmp.lt.s32.totalorder %s1147_s5, %s1147_s5 }
0x14d0   :  { %p1494_p8 = scmp.ne.s32.totalorder %s1147_s5, %s1493_s7  ;;  %p1499_p10 = scmp.lt.s32.totalorder %s1493_s7, %s1493_s7 }
0x14d2   :  { %p1500_p11 = por %p1499_p10, %p1498_p9 }
0x14d4   :  { %p1501_p12 = pnand %p1500_p11, %p1494_p8 }
0x1534   :  { %v1026_v50 = vpop.permute.xlu1 %1025 }
0x1535   :  { %v1028_v51 = vadd.f32 %v1026_v50, %v1018_v49 }
0x1537   :  { %1465 = vtanh.f32 %v1028_v51 }
0x1538   :  { %v341_v52 = vpop.permute.xlu1 %340 }
0x1539   :  { %344 = vst.msk [vmem:[#allocation2] sm:$0x2] %vm343_vm3, %v341_v52 }
0x153c   :  { %v573_v54 = vpop.permute.xlu1 %572 }
0x153d   :  { %576 = vst.msk [vmem:[#allocation2] sm:$0x8] %vm575_vm4, %v573_v54 }
0x1540   :  { %v805_v56 = vpop.permute.xlu1 %804 }
0x1541   :  { %v1466_v57 = vpop.eup %1465  ;;  %808 = vst.msk [vmem:[#allocation2] sm:$0x20] %vm807_vm5, %v805_v56 }
0x1542   :  { %1031 = vrot.lane.b32.xlu0 %v1466_v57, %s1525_s20 }
0x1546   :  { %456 = vrot.lane.b32.xlu0 %v1656_v12, %s1526_s3  ;;  %v1045_v12 = vld [vmem:[%s1761_s4 + $0x18] sm:$0xff] }
0x154a   :  { %688 = vrot.lane.b32.xlu0 %v1686_v55, %s1526_s3  ;;  %v1392_v55 = vpack.c.bf16 %v1045_v12, %v1044_v59 }
0x154c   :  { %1393 = vmatpush3.bf16.msra.mxu1 %v1392_v55 }
0x154e   :  { %920 = vrot.lane.b32.xlu0 %v918_v35, %s1526_s3 }
0x15b4   :  { %v1032_v60 = vpop.permute.xlu0 %1031 }
0x15b5   :  { %v1034_v61 = vmul.f32 %v1464_v46, %v1032_v60 }
0x15b7   :  { %1036 = vrot.lane.b32.xlu1 %v1034_v61, %s1526_s3 }
0x15b8   :  { %v457_v62 = vpop.permute.xlu0 %456 }
0x15b9   :  { %460 = vst.msk [vmem:[#allocation2] sm:$0x4] %vm459_vm6, %v457_v62 }
0x15bc   :  { %v689_v63 = vpop.permute.xlu0 %688 }
0x15bd   :  { %692 = vst.msk [vmem:[#allocation2] sm:$0x10] %vm691_vm7, %v689_v63 }
0x15c0   :  { %v921_v2 = vpop.permute.xlu0 %920 }
0x15c1   :  { %924 = vst.msk [vmem:[#allocation2] sm:$0x40] %vm923_vm8, %v921_v2 }
0x1629   :  { %v1037_v9 = vpop.permute.xlu1 %1036 }
0x162a   :  { %1040 = vst.msk [vmem:[#allocation2] sm:$0x80] %vm1039_vm9, %v1037_v9 }
0x1631   :  { %v1041_v3 = vld [vmem:[#allocation2] sm:$0xff] }
0x1632   :  { %1332 = vmatmul.mubr.msk.f32.vlgmr.msra.gmra.mrb[8].mxu1 %vm50_vm1, %v1041_v3 }
0x1705   :  { %v1122_v4 = vpop.f32.mrb[8].mxu1 }
0x1706   :  { %v1123_v5 = vadd.f32 %v1172_v0, %v1122_v4  ;;  %v1333_v13 = vpop.f32.mrb[9].mxu1 }
0x1708   :  { %v1127_v6 = vsel %vm1126_vm10, %v1123_v5, -inf }
0x1709   :  { %1128 = vmax.xlane.f32.xlu0 %v1127_v6 }
0x1796   :  { %v1129_v7 = vpop.xlane.xlu0 %1128 }
0x1797   :  { %v1130_v8 = vsub.f32 %v1123_v5, %v1129_v7 }
0x1799   :  { %v1131_v10 = vmul.f32 1.442695, %v1130_v8 }
0x179b   :  { %1467 = vpow2.f32 %v1131_v10 }
0x17a5   :  { %v1468_v11 = vpop.eup %1467 }
0x17a6   :  { %v1133_v14 = vsel %vm1126_vm10, %v1468_v11, 0.0 }
0x17a7   :  { %1134 = vadd.xlane.f32.xlu1 %v1133_v14 }
0x1834   :  { %v1135_v15 = vpop.xlane.xlu1 %1134 }
0x1835   :  { %1469 = vlog2.f32 %v1135_v15 }
0x183f   :  { %v1470_v16 = vpop.eup %1469 }
0x1840   :  { %v1137_v18 = vmul.f32 0.6931472, %v1470_v16 }
0x1842   :  { %v1138_v19 = vsub.f32 %v1130_v8, %v1137_v18 }
0x1844   :  { %1139 = vst.msk [vmem:[#allocation6] sm:$0xff] %vm1126_vm10, %v1138_v19 }
0x1845   :  { %1504 = shalt.err (!%p1501_p12)
}
0x1846   :  { %s1505_s10 = scalar_lea.hbm %s1763_s6, 128 }
0x1847   :  { %p1506_p13 = scmp.ne.s32.totalorder %s1763_s6, %s1505_s10  ;;  %p1509_p0 = scmp.lt.u32.totalorder %s1505_s10, %s1763_s6 }
0x1849   :  { %p1511_p1 = pnand %p1509_p0, %p1506_p13 }
0x184b   :  { %1514 = shalt.err (!%p1511_p1)
}
0x184c   :  { %1149 = dma.vmem_to_hbm [thread:$0]  %s1147_s5, 128, %s1763_s6, [#allocation5]  }
0x184d   :  { %1517 = dma.done.wait [#allocation5], 128  }
0x184e   :  { %1518 = vsyncadd [#allocation5], 4294967168 }
0x184f   :  { %1153 = vsyncpa [#allocation4], 1 }
0x1850   :  { %1154 = vsyncpa [#allocation5], 1 }

</bundles_post_ra>
